<compile_context>
chip_gen: v5e
topology: v5e:2x2
jax: 0.10.0
libtpu: 0.0.40
codegen_flags: <defaults>
</compile_context>

<pallas_src>
import math

import jax
import jax.numpy as jnp
from jax.experimental import pallas as pl
from jax.experimental.pallas import tpu as pltpu


def lstm_cell_kernel(xh_ref, c_ref, w_ref, b_ref, hy_ref, cy_ref):
    """One (batch-tile, hidden-tile) block of the LSTM cell.

    xh_ref : (tb, D+H)    MXU dtype (bf16/f32) -- concat([x, h], axis=1)
    c_ref  : (tb, th)     input dtype
    w_ref  : (4, D+H, th) MXU dtype            -- gate-major packed weights
    b_ref  : (4, 1, th)   f32                  -- bias_ih + bias_hh, gate-major
    hy_ref, cy_ref : (tb, th) outputs
    """
    xh = xh_ref[...]

    def gate(g):
        # Single fused MXU pass over K = D + H, f32 accumulation.
        return jnp.dot(xh, w_ref[g], preferred_element_type=jnp.float32) + b_ref[g]

    def sigmoid(z):
        # sigmoid(z) == 0.5 * (tanh(z / 2) + 1): one EUP op per gate
        # instead of exp + reciprocal.
        return 0.5 * (jnp.tanh(0.5 * z) + 1.0)

    ingate = sigmoid(gate(0))
    forgetgate = sigmoid(gate(1))
    cellgate = jnp.tanh(gate(2))
    outgate = sigmoid(gate(3))

    # All gate / state math in f32; cast only at the final store.
    cy = forgetgate * c_ref[...].astype(jnp.float32) + ingate * cellgate
    hy = outgate * jnp.tanh(cy)

    cy_ref[...] = cy.astype(cy_ref.dtype)
    hy_ref[...] = hy.astype(hy_ref.dtype)


def pack_lstm_params(weight_ih, weight_hh, bias_ih, bias_hh,
                     mxu_dtype=jnp.bfloat16):
    """One-time parameter packing (call at init time, NOT per step).

    weight_ih: (4H, D), weight_hh: (4H, H), bias_*: (4H,)  (torch conventions)
    Returns:
      w_packed: (4, D+H, H) in mxu_dtype -- gate-major, pre-transposed so the
                kernel does concat([x, h]) @ w_packed[g].
      b_packed: (4, 1, H) f32            -- bias_ih + bias_hh.
    """
    four_h, D = weight_ih.shape
    H = four_h // 4
    assert weight_hh.shape == (4 * H, H)

    w = jnp.concatenate([weight_ih.T, weight_hh.T], axis=0)        # (D+H, 4H)
    w = w.reshape(D + H, 4, H).transpose(1, 0, 2)                  # (4, D+H, H)
    w_packed = w.astype(mxu_dtype)
    b_packed = (bias_ih + bias_hh).astype(jnp.float32).reshape(4, 1, H)
    return w_packed, b_packed


def lstm_cell(x, h, c, w_packed, b_packed, *, block_b=None, block_h=None):
    """Pallas LSTMCell forward.

    x: (B, D), h/c: (B, H); w_packed/b_packed from pack_lstm_params.
    Returns (hy, cy), each (B, H) in x.dtype.
    """
    B, D = x.shape
    H = h.shape[1]
    K = D + H
    assert w_packed.shape == (4, K, H)
    assert b_packed.shape == (4, 1, H)

    mxu_dtype = w_packed.dtype
    # Fuse the two matmuls: one contraction over K = D + H per gate.
    xh = jnp.concatenate([x, h], axis=1).astype(mxu_dtype)          # (B, D+H)

    # Tile sizes: batch tile multiple of 8 sublanes, hidden tile multiple of
    # 128 lanes (or the full dim when small).  Sized well under v7x's 64 MiB.
    tb = block_b if block_b is not None else (B if B <= 256 else 256)
    th = block_h if block_h is not None else (H if H <= 512 else 512)
    grid = (pl.cdiv(B, tb), pl.cdiv(H, th))

    out_dtype = x.dtype
    hy, cy = pl.pallas_call(
        lstm_cell_kernel,
        out_shape=(
            jax.ShapeDtypeStruct((B, H), out_dtype),
            jax.ShapeDtypeStruct((B, H), out_dtype),
        ),
        grid_spec=pltpu.PrefetchScalarGridSpec(
            num_scalar_prefetch=0,
            grid=grid,
            in_specs=[
                pl.BlockSpec((tb, K), lambda i, j: (i, 0)),        # xh
                pl.BlockSpec((tb, th), lambda i, j: (i, j)),       # c
                pl.BlockSpec((4, K, th), lambda i, j: (0, 0, j)),  # packed W
                pl.BlockSpec((4, 1, th), lambda i, j: (0, 0, j)),  # packed bias
            ],
            out_specs=(
                pl.BlockSpec((tb, th), lambda i, j: (i, j)),       # hy
                pl.BlockSpec((tb, th), lambda i, j: (i, j)),       # cy
            ),
        ),
        compiler_params=pltpu.CompilerParams(
            dimension_semantics=("parallel", "parallel"),
            vmem_limit_bytes=32 * 1024 * 1024,
        ),
    )(xh, c, w_packed, b_packed)
    return hy, cy


def reference_lstm_cell(x, h, c, weight_ih, weight_hh, bias_ih, bias_hh):
    gates = x @ weight_ih.T + bias_ih + h @ weight_hh.T + bias_hh
    H = h.shape[1]
    i = jax.nn.sigmoid(gates[:, 0 * H:1 * H])
    f = jax.nn.sigmoid(gates[:, 1 * H:2 * H])
    g = jnp.tanh(gates[:, 2 * H:3 * H])
    o = jax.nn.sigmoid(gates[:, 3 * H:4 * H])
    cy = f * c + i * g
    hy = o * jnp.tanh(cy)
    return hy, cy


if __name__ == "__main__":
    B = 8
    input_size = 32
    hidden_size = 32
    stdv = 1.0 / math.sqrt(hidden_size)

    key = jax.random.PRNGKey(0)
    ks = jax.random.split(key, 7)

    # Deterministic parameter init mirroring reset_parameters(): U(-stdv, stdv).
    weight_ih = jax.random.uniform(ks[0], (4 * hidden_size, input_size),
                                   jnp.float32, -stdv, stdv)
    weight_hh = jax.random.uniform(ks[1], (4 * hidden_size, hidden_size),
                                   jnp.float32, -stdv, stdv)
    bias_ih = jax.random.uniform(ks[2], (4 * hidden_size,), jnp.float32, -stdv, stdv)
    bias_hh = jax.random.uniform(ks[3], (4 * hidden_size,), jnp.float32, -stdv, stdv)

    x = jax.random.normal(ks[4], (B, input_size), jnp.float32)
    h0 = jax.random.normal(ks[5], (B, hidden_size), jnp.float32)
    c0 = jax.random.normal(ks[6], (B, hidden_size), jnp.float32)

    hy_ref, cy_ref = reference_lstm_cell(x, h0, c0, weight_ih, weight_hh,
                                         bias_ih, bias_hh)

    # 1) f32 MXU path: tight check against the torch-equivalent f32 reference.
    w_f32, b_f32 = pack_lstm_params(weight_ih, weight_hh, bias_ih, bias_hh,
                                    mxu_dtype=jnp.float32)
    hy32, cy32 = lstm_cell(x, h0, c0, w_f32, b_f32)
    jax.block_until_ready((hy32, cy32))
    assert jnp.allclose(hy32, hy_ref, atol=5e-5, rtol=5e-5)
    assert jnp.allclose(cy32, cy_ref, atol=5e-5, rtol=5e-5)

    # 2) bf16 MXU path (default, recommended for v5e/v6e/v7x): looser tolerance
    #    to cover bf16 operand rounding; accumulation/gate math stay f32.
    w_bf16, b_bf16 = pack_lstm_params(weight_ih, weight_hh, bias_ih, bias_hh,
                                      mxu_dtype=jnp.bfloat16)
    hy16, cy16 = lstm_cell(x, h0, c0, w_bf16, b_bf16)
    jax.block_until_ready((hy16, cy16))
    assert jnp.allclose(hy16, hy_ref, atol=3e-2, rtol=3e-2)
    assert jnp.allclose(cy16, cy_ref, atol=3e-2, rtol=3e-2)

    print("KERNEL_OK")
</pallas_src>

<mosaic_0001>
module attributes {stable_mosaic.version = 11 : i64} {
  func.func @lstm_cell_kernel(%arg0: i32, %arg1: i32, %arg2: memref<8x64xf32, #tpu.memory_space<vmem>>, %arg3: memref<8x32xf32, #tpu.memory_space<vmem>>, %arg4: memref<4x64x32xf32, #tpu.memory_space<vmem>>, %arg5: memref<4x1x32xf32, #tpu.memory_space<vmem>>, %arg6: memref<8x32xf32, #tpu.memory_space<vmem>>, %arg7: memref<8x32xf32, #tpu.memory_space<vmem>>) attributes {dimension_semantics = [#tpu.dimension_semantics<parallel>, #tpu.dimension_semantics<parallel>], iteration_bounds = array<i64: 1, 1>, scalar_prefetch = 0 : i64, scratch_operands = 0 : i64, tpu.core_type = #tpu.core_type<tc>, window_params = [{transform_indices = @transform_0, window_bounds = array<i64: 8, 64>}, {transform_indices = @transform_1, window_bounds = array<i64: 8, 32>}, {transform_indices = @transform_2, window_bounds = array<i64: 4, 64, 32>}, {transform_indices = @transform_3, window_bounds = array<i64: 4, 1, 32>}, {transform_indices = @transform_4, window_bounds = array<i64: 8, 32>}, {transform_indices = @transform_5, window_bounds = array<i64: 8, 32>}]} {
    %c0 = arith.constant 0 : index
    %c0_0 = arith.constant 0 : index
    %0 = vector.load %arg2[%c0, %c0_0] : memref<8x64xf32, #tpu.memory_space<vmem>>, vector<8x64xf32>
    %c0_1 = arith.constant 0 : index
    %c0_2 = arith.constant 0 : index
    %c0_3 = arith.constant 0 : index
    %1 = vector.load %arg4[%c0_1, %c0_2, %c0_3] : memref<4x64x32xf32, #tpu.memory_space<vmem>>, vector<1x64x32xf32>
    %2 = vector.shape_cast %1 : vector<1x64x32xf32> to vector<64x32xf32>
    %cst = arith.constant dense<0.000000e+00> : vector<8x32xf32>
    %3 = tpu.matmul %0, %2, %cst {dimension_numbers = #tpu.dot_dimension_numbers<[1], [0], [0], [1], [0, 0, 1, 1], [], []>} : vector<8x64xf32>, vector<64x32xf32>, vector<8x32xf32> -> vector<8x32xf32>
    %c0_4 = arith.constant 0 : index
    %c0_5 = arith.constant 0 : index
    %c0_6 = arith.constant 0 : index
    %4 = vector.load %arg5[%c0_4, %c0_5, %c0_6] : memref<4x1x32xf32, #tpu.memory_space<vmem>>, vector<1x1x32xf32>
    %5 = vector.shape_cast %4 : vector<1x1x32xf32> to vector<1x32xf32>
    %6 = vector.broadcast %5 : vector<1x32xf32> to vector<8x32xf32>
    %7 = arith.addf %3, %6 : vector<8x32xf32>
    %cst_7 = arith.constant 5.000000e-01 : f32
    %8 = vector.broadcast %cst_7 : f32 to vector<8x32xf32>
    %9 = arith.mulf %8, %7 : vector<8x32xf32>
    %10 = math.tanh %9 : vector<8x32xf32>
    %cst_8 = arith.constant 1.000000e+00 : f32
    %11 = vector.broadcast %cst_8 : f32 to vector<8x32xf32>
    %12 = arith.addf %10, %11 : vector<8x32xf32>
    %cst_9 = arith.constant 5.000000e-01 : f32
    %13 = vector.broadcast %cst_9 : f32 to vector<8x32xf32>
    %14 = arith.mulf %13, %12 : vector<8x32xf32>
    %c1 = arith.constant 1 : index
    %c0_10 = arith.constant 0 : index
    %c0_11 = arith.constant 0 : index
    %15 = vector.load %arg4[%c1, %c0_10, %c0_11] : memref<4x64x32xf32, #tpu.memory_space<vmem>>, vector<1x64x32xf32>
    %16 = vector.shape_cast %15 : vector<1x64x32xf32> to vector<64x32xf32>
    %cst_12 = arith.constant dense<0.000000e+00> : vector<8x32xf32>
    %17 = tpu.matmul %0, %16, %cst_12 {dimension_numbers = #tpu.dot_dimension_numbers<[1], [0], [0], [1], [0, 0, 1, 1], [], []>} : vector<8x64xf32>, vector<64x32xf32>, vector<8x32xf32> -> vector<8x32xf32>
    %c1_13 = arith.constant 1 : index
    %c0_14 = arith.constant 0 : index
    %c0_15 = arith.constant 0 : index
    %18 = vector.load %arg5[%c1_13, %c0_14, %c0_15] : memref<4x1x32xf32, #tpu.memory_space<vmem>>, vector<1x1x32xf32>
    %19 = vector.shape_cast %18 : vector<1x1x32xf32> to vector<1x32xf32>
    %20 = vector.broadcast %19 : vector<1x32xf32> to vector<8x32xf32>
    %21 = arith.addf %17, %20 : vector<8x32xf32>
    %cst_16 = arith.constant 5.000000e-01 : f32
    %22 = vector.broadcast %cst_16 : f32 to vector<8x32xf32>
    %23 = arith.mulf %22, %21 : vector<8x32xf32>
    %24 = math.tanh %23 : vector<8x32xf32>
    %cst_17 = arith.constant 1.000000e+00 : f32
    %25 = vector.broadcast %cst_17 : f32 to vector<8x32xf32>
    %26 = arith.addf %24, %25 : vector<8x32xf32>
    %cst_18 = arith.constant 5.000000e-01 : f32
    %27 = vector.broadcast %cst_18 : f32 to vector<8x32xf32>
    %28 = arith.mulf %27, %26 : vector<8x32xf32>
    %c2 = arith.constant 2 : index
    %c0_19 = arith.constant 0 : index
    %c0_20 = arith.constant 0 : index
    %29 = vector.load %arg4[%c2, %c0_19, %c0_20] : memref<4x64x32xf32, #tpu.memory_space<vmem>>, vector<1x64x32xf32>
    %30 = vector.shape_cast %29 : vector<1x64x32xf32> to vector<64x32xf32>
    %cst_21 = arith.constant dense<0.000000e+00> : vector<8x32xf32>
    %31 = tpu.matmul %0, %30, %cst_21 {dimension_numbers = #tpu.dot_dimension_numbers<[1], [0], [0], [1], [0, 0, 1, 1], [], []>} : vector<8x64xf32>, vector<64x32xf32>, vector<8x32xf32> -> vector<8x32xf32>
    %c2_22 = arith.constant 2 : index
    %c0_23 = arith.constant 0 : index
    %c0_24 = arith.constant 0 : index
    %32 = vector.load %arg5[%c2_22, %c0_23, %c0_24] : memref<4x1x32xf32, #tpu.memory_space<vmem>>, vector<1x1x32xf32>
    %33 = vector.shape_cast %32 : vector<1x1x32xf32> to vector<1x32xf32>
    %34 = vector.broadcast %33 : vector<1x32xf32> to vector<8x32xf32>
    %35 = arith.addf %31, %34 : vector<8x32xf32>
    %36 = math.tanh %35 : vector<8x32xf32>
    %c3 = arith.constant 3 : index
    %c0_25 = arith.constant 0 : index
    %c0_26 = arith.constant 0 : index
    %37 = vector.load %arg4[%c3, %c0_25, %c0_26] : memref<4x64x32xf32, #tpu.memory_space<vmem>>, vector<1x64x32xf32>
    %38 = vector.shape_cast %37 : vector<1x64x32xf32> to vector<64x32xf32>
    %cst_27 = arith.constant dense<0.000000e+00> : vector<8x32xf32>
    %39 = tpu.matmul %0, %38, %cst_27 {dimension_numbers = #tpu.dot_dimension_numbers<[1], [0], [0], [1], [0, 0, 1, 1], [], []>} : vector<8x64xf32>, vector<64x32xf32>, vector<8x32xf32> -> vector<8x32xf32>
    %c3_28 = arith.constant 3 : index
    %c0_29 = arith.constant 0 : index
    %c0_30 = arith.constant 0 : index
    %40 = vector.load %arg5[%c3_28, %c0_29, %c0_30] : memref<4x1x32xf32, #tpu.memory_space<vmem>>, vector<1x1x32xf32>
    %41 = vector.shape_cast %40 : vector<1x1x32xf32> to vector<1x32xf32>
    %42 = vector.broadcast %41 : vector<1x32xf32> to vector<8x32xf32>
    %43 = arith.addf %39, %42 : vector<8x32xf32>
    %cst_31 = arith.constant 5.000000e-01 : f32
    %44 = vector.broadcast %cst_31 : f32 to vector<8x32xf32>
    %45 = arith.mulf %44, %43 : vector<8x32xf32>
    %46 = math.tanh %45 : vector<8x32xf32>
    %cst_32 = arith.constant 1.000000e+00 : f32
    %47 = vector.broadcast %cst_32 : f32 to vector<8x32xf32>
    %48 = arith.addf %46, %47 : vector<8x32xf32>
    %cst_33 = arith.constant 5.000000e-01 : f32
    %49 = vector.broadcast %cst_33 : f32 to vector<8x32xf32>
    %50 = arith.mulf %49, %48 : vector<8x32xf32>
    %c0_34 = arith.constant 0 : index
    %c0_35 = arith.constant 0 : index
    %51 = vector.load %arg3[%c0_34, %c0_35] : memref<8x32xf32, #tpu.memory_space<vmem>>, vector<8x32xf32>
    %52 = arith.mulf %28, %51 : vector<8x32xf32>
    %53 = arith.mulf %14, %36 : vector<8x32xf32>
    %54 = arith.addf %52, %53 : vector<8x32xf32>
    %55 = math.tanh %54 : vector<8x32xf32>
    %56 = arith.mulf %50, %55 : vector<8x32xf32>
    %c0_36 = arith.constant 0 : index
    %c0_37 = arith.constant 0 : index
    %57 = vector.load %arg7[%c0_36, %c0_37] : memref<8x32xf32, #tpu.memory_space<vmem>>, vector<8x32xf32>
    tpu.vector_store %arg7[%c0_36, %c0_37], %54 {strides = array<i32>} : memref<8x32xf32, #tpu.memory_space<vmem>>, vector<8x32xf32>,
    %c0_38 = arith.constant 0 : index
    %c0_39 = arith.constant 0 : index
    %58 = vector.load %arg6[%c0_38, %c0_39] : memref<8x32xf32, #tpu.memory_space<vmem>>, vector<8x32xf32>
    tpu.vector_store %arg6[%c0_38, %c0_39], %56 {strides = array<i32>} : memref<8x32xf32, #tpu.memory_space<vmem>>, vector<8x32xf32>,
    return
  }
  func.func @transform_0(%arg0: i32, %arg1: i32) -> (i32, i32) {
    %c0_i32 = arith.constant 0 : i32
    %c0_i32_0 = arith.constant 0 : i32
    return %arg0, %c0_i32 : i32, i32
  }
  func.func @transform_1(%arg0: i32, %arg1: i32) -> (i32, i32) {
    %c0_i32 = arith.constant 0 : i32
    return %arg0, %arg1 : i32, i32
  }
  func.func @transform_2(%arg0: i32, %arg1: i32) -> (i32, i32, i32) {
    %c0_i32 = arith.constant 0 : i32
    %c0_i32_0 = arith.constant 0 : i32
    %c0_i32_1 = arith.constant 0 : i32
    return %c0_i32, %c0_i32_0, %arg1 : i32, i32, i32
  }
  func.func @transform_3(%arg0: i32, %arg1: i32) -> (i32, i32, i32) {
    %c0_i32 = arith.constant 0 : i32
    %c0_i32_0 = arith.constant 0 : i32
    %c0_i32_1 = arith.constant 0 : i32
    return %c0_i32, %c0_i32_0, %arg1 : i32, i32, i32
  }
  func.func @transform_4(%arg0: i32, %arg1: i32) -> (i32, i32) {
    %c0_i32 = arith.constant 0 : i32
    return %arg0, %arg1 : i32, i32
  }
  func.func @transform_5(%arg0: i32, %arg1: i32) -> (i32, i32) {
    %c0_i32 = arith.constant 0 : i32
    return %arg0, %arg1 : i32, i32
  }
}

</mosaic_0001>

<bundles_post_ra>
// kernel: tpu_custom_call.1
= control target key start
LH: loop header
LB: loop body
LE: loop exit
PB: predicated region body
PF: predicated region fallthrough
CT: control target
= control target key end

     0   :  { %11 = vsyncpa [#allocation3], 0  ;;  %s467_s0 = inlined_call_operand.vmem [shape: f32[8,64], index: 0, kind: input, shape index: {}]   ;;  %s468_s1 = inlined_call_operand.vmem [shape: f32[8,32], index: 1, kind: input, shape index: {}]   ;;  %s469_s2 = inlined_call_operand.vmem [shape: f32[4,64,32], index: 2, kind: input, shape index: {}]   ;;  %s470_s3 = inlined_call_operand.vmem [shape: f32[4,1,32], index: 3, kind: input, shape index: {}]   ;;  %s471_s4 = inlined_call_operand.hbm [shape: f32[8,32], index: 4, kind: output, shape index: {0}]   ;;  %s472_s5 = inlined_call_operand.hbm [shape: f32[8,32], index: 5, kind: output, shape index: {1}]  }
   0x1   :  { %v29_v0 = vld [vmem:[%s469_s2 + $0x38] sm:$0xff]  ;;  %v28_v3 = vld [vmem:[%s469_s2 + $0x30] sm:$0xff]  ;;  %v27_v6 = vld [vmem:[%s469_s2 + $0x28] sm:$0xff] }
   0x2   :  { %v222_v1 = vld [vmem:[%s469_s2 + $0x78] sm:$0xff]  ;;  %46 = vmatpush.msra.mxu0 %v29_v0  ;;  %v221_v4 = vld [vmem:[%s469_s2 + $0x70] sm:$0xff]  ;;  %v220_v7 = vld [vmem:[%s469_s2 + $0x68] sm:$0xff] }
   0x3   :  { %v232_v2 = vld [vmem:[%s469_s2 + $0xb8] sm:$0xff]  ;;  %84 = vmatpush.msra.mxu1 %v222_v1  ;;  %v231_v5 = vld [vmem:[%s469_s2 + $0xb0] sm:$0xff]  ;;  %v230_v8 = vld [vmem:[%s469_s2 + $0xa8] sm:$0xff] }
   0x4   :  { %122 = vmatpush.msra.mxu2 %v232_v2  ;;  %47 = vmatpush.msra.mxu0 %v28_v3  ;;  %v242_v9 = vld [vmem:[%s469_s2 + $0xf8] sm:$0xff]  ;;  %v26_v10 = vld [vmem:[%s469_s2 + $0x20] sm:$0xff]  ;;  %v241_v12 = vld [vmem:[%s469_s2 + $0xf0] sm:$0xff] }
   0x5   :  { %85 = vmatpush.msra.mxu1 %v221_v4  ;;  %157 = vmatpush.msra.mxu3 %v242_v9  ;;  %v219_v11 = vld [vmem:[%s469_s2 + $0x60] sm:$0xff]  ;;  %v240_v14 = vld [vmem:[%s469_s2 + $0xe8] sm:$0xff]  ;;  %v25_v15 = vld [vmem:[%s469_s2 + $0x18] sm:$0xff] }
   0x6   :  { %123 = vmatpush.msra.mxu2 %v231_v5  ;;  %48 = vmatpush.msra.mxu0 %v27_v6  ;;  %v229_v13 = vld [vmem:[%s469_s2 + $0xa0] sm:$0xff]  ;;  %v218_v16 = vld [vmem:[%s469_s2 + $0x58] sm:$0xff]  ;;  %v24_v19 = vld [vmem:[%s469_s2 + $0x10] sm:$0xff] }
   0x7   :  { %86 = vmatpush.msra.mxu1 %v220_v7  ;;  %158 = vmatpush.msra.mxu3 %v241_v12  ;;  %v228_v17 = vld [vmem:[%s469_s2 + $0x98] sm:$0xff]  ;;  %v239_v18 = vld [vmem:[%s469_s2 + $0xe0] sm:$0xff]  ;;  %v217_v20 = vld [vmem:[%s469_s2 + $0x50] sm:$0xff] }
   0x8   :  { %124 = vmatpush.msra.mxu2 %v230_v8  ;;  %49 = vmatpush.msra.mxu0 %v26_v10  ;;  %v227_v21 = vld [vmem:[%s469_s2 + $0x90] sm:$0xff]  ;;  %v23_v22 = vld [vmem:[%s469_s2 + $0x8] sm:$0xff]  ;;  %v238_v24 = vld [vmem:[%s469_s2 + $0xd8] sm:$0xff] }
   0x9   :  { %87 = vmatpush.msra.mxu1 %v219_v11  ;;  %159 = vmatpush.msra.mxu3 %v240_v14  ;;  %v216_v23 = vld [vmem:[%s469_s2 + $0x48] sm:$0xff]  ;;  %v22_v26 = vld [vmem:[%s469_s2] sm:$0xff]  ;;  %v237_v28 = vld [vmem:[%s469_s2 + $0xd0] sm:$0xff] }
   0xa   :  { %125 = vmatpush.msra.mxu2 %v229_v13  ;;  %50 = vmatpush.msra.mxu0 %v25_v15  ;;  %v226_v25 = vld [vmem:[%s469_s2 + $0x88] sm:$0xff]  ;;  %v215_v27 = vld [vmem:[%s469_s2 + $0x40] sm:$0xff] }
   0xb   :  { %88 = vmatpush.msra.mxu1 %v218_v16  ;;  %160 = vmatpush.msra.mxu3 %v239_v18 }
   0xc   :  { %126 = vmatpush.msra.mxu2 %v228_v17  ;;  %51 = vmatpush.msra.mxu0 %v24_v19 }
   0xd   :  { %89 = vmatpush.msra.mxu1 %v217_v20  ;;  %161 = vmatpush.msra.mxu3 %v238_v24 }
   0xe   :  { %127 = vmatpush.msra.mxu2 %v227_v21 }
   0xf   :  { %12 = vsyncpa [#allocation5], 0  ;;  %52 = vmatpush.msra.mxu0 %v23_v22  ;;  %90 = vmatpush.msra.mxu1 %v216_v23  ;;  %v225_v29 = vld [vmem:[%s469_s2 + $0x80] sm:$0xff]  ;;  %vm34_vm0 = vcmask 523264   ;;  %v236_v31 = vld [vmem:[%s469_s2 + $0xc8] sm:$0xff]  ;;  %s313_s17 = smov [#allocation4]  }
  0x10   :  { %v21_v30 = vld [vmem:[%s467_s0] sm:$0xff]  ;;  %128 = vmatpush.msra.mxu2 %v226_v25  ;;  %162 = vmatpush.msra.mxu3 %v237_v28  ;;  %s198_s18 = sshll.u32 %s313_s17, 4  ;;  %s200_s20 = sshll.u32 %s472_s5, 4  ;;  %vm179_vm1 = vcmask 261120   ;;  %s199_s18 = int_to_ptr.vmem [resolvable:$true] %s198_s18  ;;  %s201_s20 = int_to_ptr.hbm [resolvable:$true] %s200_s20 }
  0x11   :  { %53 = vmatpush.msra.mxu0 %v22_v26  ;;  %91 = vmatpush.msra.mxu1 %v215_v27  ;;  %v235_v32 = vld [vmem:[%s469_s2 + $0xc0] sm:$0xff]  ;;  %s189_s24 = sshll.u32 %s471_s4, 4  ;;  %s190_s24 = int_to_ptr.hbm [resolvable:$true] %s189_s24 }
  0x12   :  { %129 = vmatpush.msra.mxu2 %v225_v29  ;;  %214 = vmatmul.msk.f32.vlgmr.msra.gmra.mxu0 %vm34_vm0, %v21_v30  ;;  %v247_v33 = vld [vmem:[%s470_s3] ss:$0 sm:$0xff]  ;;  %v248_v34 = vld [vmem:[%s470_s3 + $0x1] ss:$0 sm:$0xff]  ;;  %v249_v41 = vld [vmem:[%s470_s3 + $0x2] ss:$0 sm:$0xff] }
  0x13   :  { %224 = vmatmul.msk.f32.vlgmr.msra.gmra.mxu1 %vm34_vm0, %v21_v30  ;;  %234 = vmatmul.msk.f32.vlgmr.msra.gmra.mxu2 %vm34_vm0, %v21_v30  ;;  %v250_v44 = vld [vmem:[%s470_s3 + $0x3] ss:$0 sm:$0xff] }
  0x14   :  { %163 = vmatpush.msra.mxu3 %v236_v31  ;;  %v173_v52 = vld [vmem:[%s468_s1] sm:$0xff]  ;;  %s314_s1 = smov [#allocation2]  }
  0x15   :  { %s187_s21 = sshll.u32 %s314_s1, 4  ;;  %s188_s21 = int_to_ptr.vmem [resolvable:$true] %s187_s21 }
  0x16   :  { %164 = vmatpush.msra.mxu3 %v235_v32 }
  0x17   :  { %244 = vmatmul.msk.f32.vlgmr.msra.gmra.mxu3 %vm34_vm0, %v21_v30 }
  0x8f   :  { %v55_v35 = vpop.f32.mrf.mxu0 }
  0x90   :  { %v56_v36 = vadd.f32 %v247_v33, %v55_v35  ;;  %v93_v37 = vpop.f32.mrf.mxu1 }
  0x91   :  { %v94_v38 = vadd.f32 %v248_v34, %v93_v37 }
  0x92   :  { %v58_v39 = vmul.f32 0.5, %v56_v36 }
  0x93   :  { %v96_v40 = vmul.f32 0.5, %v94_v38 }
  0x94   :  { %251 = vtanh.f32 %v58_v39 }
  0x95   :  { %253 = vtanh.f32 %v96_v40 }
  0x96   :  { %v131_v42 = vpop.f32.mrf.mxu2 }
  0x97   :  { %v132_v43 = vadd.f32 %v249_v41, %v131_v42 }
  0x99   :  { %255 = vtanh.f32 %v132_v43 }
  0x9a   :  { %v252_v45 = vpop.eup %251  ;;  %v166_v46 = vpop.f32.mrf.mxu3 }
  0x9b   :  { %v254_v47 = vpop.eup %253  ;;  %v60_v48 = vadd.f32 1.0, %v252_v45  ;;  %v167_v49 = vadd.f32 %v250_v44, %v166_v46 }
  0x9c   :  { %v98_v50 = vadd.f32 1.0, %v254_v47 }
  0x9d   :  { %v61_v51 = vmul.f32 0.5, %v60_v48  ;;  %v169_v53 = vmul.f32 0.5, %v167_v49 }
  0x9e   :  { %v99_v54 = vmul.f32 0.5, %v98_v50 }
  0x9f   :  { %v256_v55 = vpop.eup %255  ;;  %257 = vtanh.f32 %v169_v53 }
  0xa0   :  { %v174_v56 = vmul.f32 %v173_v52, %v99_v54  ;;  %v175_v57 = vmul.f32 %v256_v55, %v61_v51 }
  0xa2   :  { %v176_v58 = vadd.f32 %v175_v57, %v174_v56 }
  0xa4   :  { %259 = vtanh.f32 %v176_v58  ;;  %180 = vst.msk [vmem:[#allocation4] sm:$0xff] %vm179_vm1, %v176_v58 }
  0xa5   :  { %v258_v59 = vpop.eup %257  ;;  %203 = dma.vmem_to_hbm [thread:$0]  %s199_s18, 128, %s201_s20, [#allocation5]  }
  0xa6   :  { %v171_v60 = vadd.f32 1.0, %v258_v59 }
  0xa8   :  { %v172_v61 = vmul.f32 0.5, %v171_v60 }
  0xaa   :  { %v260_v62 = vpop.eup %259 }
  0xab   :  { %v178_v63 = vmul.f32 %v260_v62, %v172_v61 }
  0xad   :  { %181 = vst.msk [vmem:[#allocation2] sm:$0xff] %vm179_vm1, %v178_v63 }
  0xae   :  { %192 = dma.vmem_to_hbm [thread:$0]  %s188_s21, 128, %s190_s24, [#allocation3]  }
  0xaf   :  { %309 = dma.done.wait [#allocation3], 128  }
  0xb0   :  { %310 = vsyncadd [#allocation3], 4294967168 }
  0xb1   :  { %311 = dma.done.wait [#allocation5], 128  }
  0xb2   :  { %312 = vsyncadd [#allocation5], 4294967168 }
  0xb3   :  { %212 = vsyncpa [#allocation3], 1 }
  0xb4   :  { %213 = vsyncpa [#allocation5], 1 }

</bundles_post_ra>
